<compile_context>
chip_gen: v5e
topology: v5e:2x2
jax: 0.10.0
libtpu: 0.0.40
codegen_flags: <defaults>
</compile_context>

<pallas_src>
import math

import jax
import jax.numpy as jnp
from jax.experimental import pallas as pl
from jax.experimental.pallas import tpu as pltpu

_LANE = 128  # lane width used for the lane-dense output slab


def _rnn_seq_kernel(x_ref, h0_ref, wxc_ref, whc_ref, bc_ref, wo_ref, bo_ref,
                    out_ref, hseq_ref, h_scr):
    """One grid step == one RNN timestep.

    x_ref   : (B, I)      current timestep input (streamed per grid step)
    h0_ref  : (B, H)      initial hidden (read only at t == 0)
    wxc_ref : (I, H)      cell weight, input part   (VMEM-resident)
    whc_ref : (H, H)      cell weight, hidden part  (VMEM-resident)
    bc_ref  : (1, H)      cell bias
    wo_ref  : (1, H)      output weight as a row (VPU reduce, no MXU)
    bo_ref  : (1,) SMEM   output bias scalar
    out_ref : (B, 128)    lane-dense output slab (column 0 is the real output)
    hseq_ref: (B, H)      hidden state emitted for this timestep
    h_scr   : (B, H) f32  VMEM carry of the hidden state across grid steps
    """
    t = pl.program_id(0)

    @pl.when(t == 0)
    def _():
        h_scr[...] = h0_ref[...].astype(jnp.float32)

    x = x_ref[...].astype(jnp.float32)     # (B, I)
    h = h_scr[...]                         # (B, H), f32 carry

    # cell: Linear(I+H, H) on cat([x, h], dim=1), as a split matmul
    # (x @ Wc_x^T + h @ Wc_h^T == cat(x, h) @ Wc^T).
    hidden = (
        jnp.dot(x, wxc_ref[...], preferred_element_type=jnp.float32)
        + jnp.dot(h, whc_ref[...], preferred_element_type=jnp.float32)
        + bc_ref[...]
    )
    h_scr[...] = hidden                    # carry in f32 for the next step
    hseq_ref[...] = hidden.astype(hseq_ref.dtype)

    # output_layer: Linear(H, 1) as VPU multiply + lane reduction (N=1 matmul
    # would waste a full MXU systolic pass for a single column).
    o = jnp.sum(hidden * wo_ref[...], axis=-1, keepdims=True) + bo_ref[0]  # (B,1)

    # Lane-dense store: broadcast the single column across the 128-lane slab
    # so the store is an unmasked vst; the wrapper slices column 0 back out.
    out_ref[...] = jnp.broadcast_to(o, out_ref.shape).astype(out_ref.dtype)


def prepare_params(w_cell, b_cell, w_out, b_out):
    """One-time weight prep, hoisted out of the recurrent call path.

    w_cell: (H, I+H) torch layout, b_cell: (H,)
    w_out : (1, H)   torch layout, b_out : (1,)
    """
    H = b_cell.shape[0]
    I = w_cell.shape[1] - H
    wc_t = jnp.asarray(w_cell).T                       # (I+H, H)
    return dict(
        wxc=wc_t[:I, :],                               # (I, H)
        whc=wc_t[I:, :],                               # (H, H)
        bc=jnp.asarray(b_cell).reshape(1, H),          # (1, H)
        wo=jnp.asarray(w_out).reshape(1, H),           # (1, H) row for VPU reduce
        bo=jnp.asarray(b_out).reshape(1).astype(jnp.float32),  # (1,) -> SMEM
    )


@jax.jit
def linear_rnn_sequence(xs, h0, params):
    """Run the whole recurrence in one pallas_call.

    xs: (T, B, I), h0: (B, H).
    Returns (outputs (T, B, 1), hiddens (T, B, H)) — identical to calling the
    PyTorch forward T times while threading the hidden state.
    """
    T, B, I = xs.shape
    H = h0.shape[1]
    wxc, whc, bc, wo, bo = (params["wxc"], params["whc"], params["bc"],
                            params["wo"], params["bo"])

    out_slab, hseq = pl.pallas_call(
        _rnn_seq_kernel,
        out_shape=(
            jax.ShapeDtypeStruct((T, B, _LANE), xs.dtype),  # lane-dense outputs
            jax.ShapeDtypeStruct((T, B, H), xs.dtype),      # hidden per step
        ),
        grid=(T,),
        in_specs=[
            pl.BlockSpec((None, B, I), lambda t: (t, 0, 0)),   # x_t streamed
            pl.BlockSpec((B, H), lambda t: (0, 0)),            # h0 (used at t=0)
            pl.BlockSpec((I, H), lambda t: (0, 0)),            # weights: constant
            pl.BlockSpec((H, H), lambda t: (0, 0)),            #   index_map ->
            pl.BlockSpec((1, H), lambda t: (0, 0)),            #   VMEM-resident,
            pl.BlockSpec((1, H), lambda t: (0, 0)),            #   DMA'd once
            pl.BlockSpec(memory_space=pltpu.MemorySpace.SMEM), # bo scalar in SMEM
        ],
        out_specs=(
            pl.BlockSpec((None, B, _LANE), lambda t: (t, 0, 0)),
            pl.BlockSpec((None, B, H), lambda t: (t, 0, 0)),
        ),
        scratch_shapes=[pltpu.VMEM((B, H), jnp.float32)],       # hidden carry
        compiler_params=pltpu.CompilerParams(
            dimension_semantics=("arbitrary",)),                 # recurrence
    )(xs, h0, wxc, whc, bc, wo, bo)

    return out_slab[:, :, :1], hseq


def linear_rnn_forward(x, h, params):
    """Single-step forward with the exact LinearRNNModule.forward semantics:
    (x (B,I), h (B,H)) -> (output (B,1), hidden_new (B,H))."""
    out, hseq = linear_rnn_sequence(x[None], h, params)
    return out[0], hseq[0]


if __name__ == "__main__":
    # Small shapes consistent with the module: batch=2, input=16, hidden=32, seq=8.
    B, I, H, T = 2, 16, 32, 8
    key = jax.random.PRNGKey(0)
    k_x, k_wc, k_bc, k_wo, k_bo = jax.random.split(key, 5)

    xs = jax.random.normal(k_x, (T, B, I), dtype=jnp.float32)
    h0 = jnp.zeros((1, H), dtype=jnp.float32)        # get_init_hidden()
    h0 = jnp.broadcast_to(h0, (B, H))                # batch-broadcast hidden

    # Deterministic parameter init (PyTorch nn.Linear-style uniform bounds).
    bound_c = 1.0 / math.sqrt(I + H)
    w_cell = jax.random.uniform(k_wc, (H, I + H), jnp.float32, -bound_c, bound_c)
    b_cell = jax.random.uniform(k_bc, (H,), jnp.float32, -bound_c, bound_c)
    bound_o = 1.0 / math.sqrt(H)
    w_out = jax.random.uniform(k_wo, (1, H), jnp.float32, -bound_o, bound_o)
    b_out = jax.random.uniform(k_bo, (1,), jnp.float32, -bound_o, bound_o)

    # Weight prep done exactly once, outside the recurrent call path.
    params = prepare_params(w_cell, b_cell, w_out, b_out)

    # Fused-sequence kernel: T recurrent steps in a single pallas_call.
    outs, hiddens = linear_rnn_sequence(xs, h0, params)
    jax.block_until_ready((outs, hiddens))

    # Single-step path (exact module forward signature), reuses the same kernel.
    out1, h1 = linear_rnn_forward(xs[0], h0, params)
    jax.block_until_ready((out1, h1))

    # Pure-JAX reference: T repeated calls of the PyTorch forward.
    h = h0
    ref_outs, ref_hs = [], []
    for t in range(T):
        combined = jnp.concatenate([xs[t], h], axis=1)
        h = combined @ w_cell.T + b_cell
        o = h @ w_out.T + b_out
        ref_outs.append(o)
        ref_hs.append(h)
    ref_outs = jnp.stack(ref_outs)
    ref_hs = jnp.stack(ref_hs)

    assert jnp.allclose(hiddens, ref_hs, atol=1e-4, rtol=1e-5), "hidden sequence mismatch"
    assert jnp.allclose(outs, ref_outs, atol=1e-4, rtol=1e-5), "output sequence mismatch"
    assert jnp.allclose(h1, ref_hs[0], atol=1e-5), "single-step hidden mismatch"
    assert jnp.allclose(out1, ref_outs[0], atol=1e-5), "single-step output mismatch"

    print("KERNEL_OK")
</pallas_src>

<mosaic_0001>
module attributes {stable_mosaic.version = 11 : i64} {
  func.func @_rnn_seq_kernel(%arg0: i32, %arg1: memref<1x2x16xf32, #tpu.memory_space<vmem>>, %arg2: memref<2x32xf32, #tpu.memory_space<vmem>>, %arg3: memref<16x32xf32, #tpu.memory_space<vmem>>, %arg4: memref<32x32xf32, #tpu.memory_space<vmem>>, %arg5: memref<1x32xf32, #tpu.memory_space<vmem>>, %arg6: memref<1x32xf32, #tpu.memory_space<vmem>>, %arg7: memref<1xf32, #tpu.memory_space<smem>>, %arg8: memref<1x2x128xf32, #tpu.memory_space<vmem>>, %arg9: memref<1x2x32xf32, #tpu.memory_space<vmem>>, %arg10: memref<2x32xf32, #tpu.memory_space<vmem>>) attributes {dimension_semantics = [#tpu.dimension_semantics<arbitrary>], iteration_bounds = array<i64: 8>, scalar_prefetch = 0 : i64, scratch_operands = 1 : i64, tpu.core_type = #tpu.core_type<tc>, window_params = [{transform_indices = @transform_0, window_bounds = array<i64: 1, 2, 16>}, {pipeline_mode = #tpu.pipeline_mode<synchronous>, transform_indices = @transform_1, window_bounds = array<i64: 2, 32>}, {pipeline_mode = #tpu.pipeline_mode<synchronous>, transform_indices = @transform_2, window_bounds = array<i64: 16, 32>}, {pipeline_mode = #tpu.pipeline_mode<synchronous>, transform_indices = @transform_3, window_bounds = array<i64: 32, 32>}, {pipeline_mode = #tpu.pipeline_mode<synchronous>, transform_indices = @transform_4, window_bounds = array<i64: 1, 32>}, {pipeline_mode = #tpu.pipeline_mode<synchronous>, transform_indices = @transform_5, window_bounds = array<i64: 1, 32>}, {transform_indices = @transform_6, window_bounds = array<i64: 1>}, {transform_indices = @transform_7, window_bounds = array<i64: 1, 2, 128>}, {transform_indices = @transform_8, window_bounds = array<i64: 1, 2, 32>}]} {
    %c0_i32 = arith.constant 0 : i32
    %0 = arith.cmpi eq, %arg0, %c0_i32 : i32
    %1 = arith.extui %0 : i1 to i32
    %c0_i32_0 = arith.constant 0 : i32
    %2 = arith.cmpi ne, %1, %c0_i32_0 : i32
    scf.if %2 {
      %c0_24 = arith.constant 0 : index
      %c0_25 = arith.constant 0 : index
      %31 = vector.load %arg2[%c0_24, %c0_25] : memref<2x32xf32, #tpu.memory_space<vmem>>, vector<2x32xf32>
      %c0_26 = arith.constant 0 : index
      %c0_27 = arith.constant 0 : index
      %32 = vector.load %arg10[%c0_26, %c0_27] : memref<2x32xf32, #tpu.memory_space<vmem>>, vector<2x32xf32>
      tpu.vector_store %arg10[%c0_26, %c0_27], %31 {strides = array<i32>} : memref<2x32xf32, #tpu.memory_space<vmem>>, vector<2x32xf32>,
    } else {
    }
    %c0 = arith.constant 0 : index
    %c0_1 = arith.constant 0 : index
    %c0_2 = arith.constant 0 : index
    %3 = vector.load %arg1[%c0, %c0_1, %c0_2] : memref<1x2x16xf32, #tpu.memory_space<vmem>>, vector<1x2x16xf32>
    %4 = vector.shape_cast %3 : vector<1x2x16xf32> to vector<2x16xf32>
    %c0_3 = arith.constant 0 : index
    %c0_4 = arith.constant 0 : index
    %5 = vector.load %arg10[%c0_3, %c0_4] : memref<2x32xf32, #tpu.memory_space<vmem>>, vector<2x32xf32>
    %c0_5 = arith.constant 0 : index
    %c0_6 = arith.constant 0 : index
    %6 = vector.load %arg3[%c0_5, %c0_6] : memref<16x32xf32, #tpu.memory_space<vmem>>, vector<16x32xf32>
    %cst = arith.constant dense<0.000000e+00> : vector<2x32xf32>
    %7 = tpu.matmul %4, %6, %cst {dimension_numbers = #tpu.dot_dimension_numbers<[1], [0], [0], [1], [0, 0, 1, 1], [], []>} : vector<2x16xf32>, vector<16x32xf32>, vector<2x32xf32> -> vector<2x32xf32>
    %c0_7 = arith.constant 0 : index
    %c0_8 = arith.constant 0 : index
    %8 = vector.load %arg4[%c0_7, %c0_8] : memref<32x32xf32, #tpu.memory_space<vmem>>, vector<32x32xf32>
    %cst_9 = arith.constant dense<0.000000e+00> : vector<2x32xf32>
    %9 = tpu.matmul %5, %8, %cst_9 {dimension_numbers = #tpu.dot_dimension_numbers<[1], [0], [0], [1], [0, 0, 1, 1], [], []>} : vector<2x32xf32>, vector<32x32xf32>, vector<2x32xf32> -> vector<2x32xf32>
    %10 = arith.addf %7, %9 : vector<2x32xf32>
    %c0_10 = arith.constant 0 : index
    %c0_11 = arith.constant 0 : index
    %11 = vector.load %arg5[%c0_10, %c0_11] : memref<1x32xf32, #tpu.memory_space<vmem>>, vector<1x32xf32>
    %12 = vector.broadcast %11 : vector<1x32xf32> to vector<2x32xf32>
    %13 = arith.addf %10, %12 : vector<2x32xf32>
    %c0_12 = arith.constant 0 : index
    %c0_13 = arith.constant 0 : index
    %14 = vector.load %arg10[%c0_12, %c0_13] : memref<2x32xf32, #tpu.memory_space<vmem>>, vector<2x32xf32>
    tpu.vector_store %arg10[%c0_12, %c0_13], %13 {strides = array<i32>} : memref<2x32xf32, #tpu.memory_space<vmem>>, vector<2x32xf32>,
    %c0_14 = arith.constant 0 : index
    %c0_15 = arith.constant 0 : index
    %c0_16 = arith.constant 0 : index
    %15 = vector.load %arg9[%c0_14, %c0_15, %c0_16] : memref<1x2x32xf32, #tpu.memory_space<vmem>>, vector<1x2x32xf32>
    %16 = vector.shape_cast %15 : vector<1x2x32xf32> to vector<2x32xf32>
    %17 = vector.shape_cast %13 : vector<2x32xf32> to vector<1x2x32xf32>
    tpu.vector_store %arg9[%c0_14, %c0_15, %c0_16], %17 {strides = array<i32>} : memref<1x2x32xf32, #tpu.memory_space<vmem>>, vector<1x2x32xf32>,
    %c0_17 = arith.constant 0 : index
    %c0_18 = arith.constant 0 : index
    %18 = vector.load %arg6[%c0_17, %c0_18] : memref<1x32xf32, #tpu.memory_space<vmem>>, vector<1x32xf32>
    %19 = vector.broadcast %18 : vector<1x32xf32> to vector<2x32xf32>
    %20 = arith.mulf %13, %19 : vector<2x32xf32>
    %cst_19 = arith.constant dense<0.000000e+00> : vector<2xf32>
    %21 = vector.multi_reduction <add>, %20, %cst_19 [1] : vector<2x32xf32> to vector<2xf32>
    %22 = vector.shape_cast %21 : vector<2xf32> to vector<2x1xf32>
    %c0_20 = arith.constant 0 : index
    %23 = memref.load %arg7[%c0_20] : memref<1xf32, #tpu.memory_space<smem>>
    %24 = vector.broadcast %23 : f32 to vector<2x1xf32>
    %25 = arith.addf %22, %24 : vector<2x1xf32>
    %26 = vector.shape_cast %25 : vector<2x1xf32> to vector<2x1xf32>
    %27 = vector.broadcast %26 : vector<2x1xf32> to vector<2x128xf32>
    %c0_21 = arith.constant 0 : index
    %c0_22 = arith.constant 0 : index
    %c0_23 = arith.constant 0 : index
    %28 = vector.load %arg8[%c0_21, %c0_22, %c0_23] : memref<1x2x128xf32, #tpu.memory_space<vmem>>, vector<1x2x128xf32>
    %29 = vector.shape_cast %28 : vector<1x2x128xf32> to vector<2x128xf32>
    %30 = vector.shape_cast %27 : vector<2x128xf32> to vector<1x2x128xf32>
    tpu.vector_store %arg8[%c0_21, %c0_22, %c0_23], %30 {strides = array<i32>} : memref<1x2x128xf32, #tpu.memory_space<vmem>>, vector<1x2x128xf32>,
    return
  }
  func.func @transform_0(%arg0: i32) -> (i32, i32, i32) {
    %c0_i32 = arith.constant 0 : i32
    %c0_i32_0 = arith.constant 0 : i32
    %c0_i32_1 = arith.constant 0 : i32
    return %arg0, %c0_i32, %c0_i32_0 : i32, i32, i32
  }
  func.func @transform_1(%arg0: i32) -> (i32, i32) {
    %c0_i32 = arith.constant 0 : i32
    %c0_i32_0 = arith.constant 0 : i32
    %c0_i32_1 = arith.constant 0 : i32
    return %c0_i32, %c0_i32_0 : i32, i32
  }
  func.func @transform_2(%arg0: i32) -> (i32, i32) {
    %c0_i32 = arith.constant 0 : i32
    %c0_i32_0 = arith.constant 0 : i32
    %c0_i32_1 = arith.constant 0 : i32
    return %c0_i32, %c0_i32_0 : i32, i32
  }
  func.func @transform_3(%arg0: i32) -> (i32, i32) {
    %c0_i32 = arith.constant 0 : i32
    %c0_i32_0 = arith.constant 0 : i32
    %c0_i32_1 = arith.constant 0 : i32
    return %c0_i32, %c0_i32_0 : i32, i32
  }
  func.func @transform_4(%arg0: i32) -> (i32, i32) {
    %c0_i32 = arith.constant 0 : i32
    %c0_i32_0 = arith.constant 0 : i32
    %c0_i32_1 = arith.constant 0 : i32
    return %c0_i32, %c0_i32_0 : i32, i32
  }
  func.func @transform_5(%arg0: i32) -> (i32, i32) {
    %c0_i32 = arith.constant 0 : i32
    %c0_i32_0 = arith.constant 0 : i32
    %c0_i32_1 = arith.constant 0 : i32
    return %c0_i32, %c0_i32_0 : i32, i32
  }
  func.func @transform_6(%arg0: i32) -> i32 {
    %c0_i32 = arith.constant 0 : i32
    %c0_i32_0 = arith.constant 0 : i32
    return %c0_i32 : i32
  }
  func.func @transform_7(%arg0: i32) -> (i32, i32, i32) {
    %c0_i32 = arith.constant 0 : i32
    %c0_i32_0 = arith.constant 0 : i32
    %c0_i32_1 = arith.constant 0 : i32
    return %arg0, %c0_i32, %c0_i32_0 : i32, i32, i32
  }
  func.func @transform_8(%arg0: i32) -> (i32, i32, i32) {
    %c0_i32 = arith.constant 0 : i32
    %c0_i32_0 = arith.constant 0 : i32
    %c0_i32_1 = arith.constant 0 : i32
    return %arg0, %c0_i32, %c0_i32_0 : i32, i32, i32
  }
}

</mosaic_0001>

<bundles_post_ra>
// kernel: linear_rnn_sequence.1
= control target key start
LH: loop header
LB: loop body
LE: loop exit
PB: predicated region body
PF: predicated region fallthrough
CT: control target
= control target key end

     0   :  { %s1059_s0 = inlined_call_operand.hbm [shape: f32[8,2,16], index: 0, kind: input, shape index: {}]   ;;  %s1060_s1 = inlined_call_operand.vmem [shape: f32[2,32], index: 1, kind: input, shape index: {}]   ;;  %s1061_s2 = inlined_call_operand.hbm [shape: f32[16,32], index: 2, kind: input, shape index: {}]   ;;  %s1062_s3 = inlined_call_operand.hbm [shape: f32[32,32], index: 3, kind: input, shape index: {}]   ;;  %s1063_s4 = inlined_call_operand.vmem [shape: f32[1,32], index: 4, kind: input, shape index: {}]   ;;  %s1064_s5 = inlined_call_operand.vmem [shape: f32[1,32], index: 5, kind: input, shape index: {}]   ;;  %s1065_s6 = inlined_call_operand.<no memory space> [shape: f32[1], index: 6, kind: input, shape index: {}]   ;;  %s1066_s7 = inlined_call_operand.vmem [shape: f32[8,2,128], index: 7, kind: output, shape index: {0}]   ;;  %s1067_s8 = inlined_call_operand.hbm [shape: f32[8,2,32], index: 8, kind: output, shape index: {1}]  }
   0x1   :  { %1068 = sst [smem:[#allocation14_spill]] %s1061_s2 }
   0x2   :  { %1069 = sst [smem:[#allocation15_spill]] %s1062_s3 }
   0x3   :  { %14 = sst [smem:[#allocation3]] %s1065_s6 }
   0x4   :  { %15 = vsyncpa [#allocation5], 0 }
   0x5   :  { %17 = vsyncpa [#allocation5 + $0x1], 0 }
   0x6   :  { %18 = vsyncpa [#allocation8], 0 }
   0x7   :  { %19 = vsyncpa [#allocation6], 0 }
   0x8   :  { %21 = vsyncpa [#allocation6 + $0x1], 0  ;;  %s892_s29 = smov 0   ;;  %s894_s30 = smov 0  }
   0x9   :  { %s896_s9 = smov 0   ;;  %s898_s10 = smov 0  }
   0xa LB: > { %s1070_s2 = sld [smem:[#allocation14_spill]]  ;;  %s916_s13 = sadd.s32 4294967295, %s838_s10   ;;  %s838_s10 = sphi %s898_s10, %s1082_s10   ;;  %s834_s9 = sphi %s896_s9, %s1081_s9   ;;  %s830_s30 = sphi %s894_s30, %s1080_s30   ;;  %s826_s29 = sphi %s892_s29, %s1079_s29  }
   0xb   : > { %p588_p0 = scmp.ge.s32.totalorder %s838_s10, 1  ;;  %p48_p1 = scmp.eq.s32.totalorder %s916_s13, 0 }
   0xc   : > { %p236_p2 = scmp.lt.s32.totalorder %s838_s10, 9  ;;  %s840_s15 = smov [#allocation7]  }
   0xd   : > { %s252_s16 = sshll.u32 %s840_s15, 4  ;;  %s1072_s3 = sld [smem:[#allocation15_spill]]  ;;  %s253_s16 = int_to_ptr.vmem [resolvable:$true] %s252_s16 }
   0xe   : > { %p922_p4 = pnand %p588_p0, %p236_p2  ;;  %s841_s20 = smov [#allocation9]  }
   0xf   : > { %s266_s21 = sshll.u32 %s841_s20, 4  ;;  %s842_s22 = smov 128   ;;  %s267_s21 = int_to_ptr.vmem [resolvable:$true] %s266_s21 }
  0x10   : > { %s250_s12 = sshll.u32 %s1070_s2, 4  ;;  %p619_p5 = pneg %p922_p4  ;;  %s251_s12 = int_to_ptr.hbm [resolvable:$true] %s250_s12 }
  0x11   : > { %s843_s23 = smov 8   ;;  %s587_s24 = sadd.s32 4294967294, %s838_s10  }
  0x12   : > { %p620_p6 = pnand %p619_p5, %p48_p1  ;;  %s935_s25 = sadd.s32 1, %s838_s10  }
  0x13   : > { %s264_s19 = sshll.u32 %s1072_s3, 4  ;;  %s31_s26 = ssub.s32 %s838_s10, %s935_s25  ;;  %s265_s19 = int_to_ptr.hbm [resolvable:$true] %s264_s19 }
  0x14   : > { %622 = dma.hbm_to_vmem [thread:$0]  (!%p620_p6), %s251_s12, 256, %s253_s16, [#allocation8], %s842_s22, %s842_s22, %s843_s23  }
  0x15   : > { %625 = dma.hbm_to_vmem [thread:$0]  (!%p620_p6), %s265_s19, 512, %s267_s21, [#allocation8], %s842_s22, %s842_s22, %s843_s23  }
  0x16   : > { %s34_s27 = sadd.s32 1, %s834_s9  ;;  %p32_p7 = scmp.eq.s32.totalorder %s31_s26, 0 }
  0x17   : > { %p41_p8 = scmp.ne.s32.totalorder %s834_s9, %s830_s30  ;;  %p42_p9 = scmp.eq.s32.totalorder %s838_s10, 0 }
  0x18   : > { %p47_p10 = scmp.ne.s32.totalorder %s830_s30, %s826_s29  ;;  %p223_p13 = scmp.eq.s32.totalorder %s916_s13, 7 }
  0x19   : > { %s946_s28 = scalar_select %p32_p7, %s834_s9, %s34_s27  }
  0x1a   : > { %p948_p11 = por %p42_p9, %p41_p8  ;;  %p954_p12 = por %p48_p1, %p47_p10 }
  0x1b   : > { %p229_p0 = scmp.eq.s32.totalorder %s587_s24, 7  ;;  %p636_p2 = scmp.lt.s32.totalorder %s838_s10, 8 }
  0x1c   : > { %s289_s12 = sand.u32 1, %s834_s9   ;;  %p961_p5 = por %p223_p13, %p41_p8 }
  0x1d   : > { %p965_p6 = por %p229_p0, %p47_p10  ;;  %s592_s17 = sshll.u32 %s289_s12, 1 }
  0x1e   : > { %s593_s18 = sshll.u32 %s838_s10, 1  ;;  %s293_s22 = scalar_lea.vmem [#allocation4], %s592_s17 }
  0x1f   : > { %s297_s21 = scalar_lea.hbm %s1059_s0, %s593_s18  ;;  %s301_s23 = sshll.u32 %s293_s22, 4  ;;  %s302_s23 = int_to_ptr.vmem [resolvable:$true] %s301_s23 }
  0x20   : > { %s299_s26 = sshll.u32 %s297_s21, 4  ;;  %p975_p7 = pnand %p636_p2, %p948_p11  ;;  %s300_s26 = int_to_ptr.hbm [resolvable:$true] %s299_s26 }
  0x21   : > { %s290_s27 = scalar_lea.sflag [#allocation5], %s289_s12  ;;  %s738_s2 = sshra.s32 %s300_s26, 4  ;;  %s739_s2 = int_to_ptr.hbm [resolvable:$true] %s738_s2 }
  0x22   : > { %s740_s3 = scalar_lea.hbm %s739_s2, 2  ;;  %p742_p9 = pneg %p975_p7 }
  0x23   : > { %p741_p8 = scmp.ne.s32.totalorder %s739_s2, %s740_s3  ;;  %s745_s19 = scalar_lea.hbm %s1059_s0, 16 }
  0x24   : > { %p746_p11 = scmp.lt.s32.totalorder %s739_s2, %s1059_s0  ;;  %p747_p0 = scmp.lt.s32.totalorder %s745_s19, %s740_s3 }
  0x25   : > { %p743_p10 = pnand %p742_p9, %p741_p8 }
  0x26   : > { %p748_p2 = por %p747_p0, %p746_p11 }
  0x27   : > { %p744_p13 = pneg %p743_p10 }
  0x29   : > { %p749_p3 = pnand %p748_p2, %p744_p13 }
  0x2b   : > { %752 = shalt.err (!%p749_p3)
}
  0x2c   : > { %629 = dma.hbm_to_vmem [thread:$0]  (!%p975_p7), %s300_s26, 32, %s302_s23, %s290_s27  }
  0x2d   : > { %310 = sbr.rel (%p922_p4) target bundleno = 324 (0x144), region = 48  ;;  %s992_s12 = sand.u32 (!%p922_p4), 1, %s830_s30  }
  0x2e   : > { %s595_s21 = sshll.u32 (!%p922_p4), %s992_s12, 1  ;;  %s313_s22 = scalar_lea.sflag (!%p922_p4), [#allocation5], %s992_s12 }
  0x2f   : > { %s316_s17 = scalar_lea.vmem (!%p922_p4), [#allocation4], %s595_s21 }
  0x32   : > { %813 = dma.done.wait (%p954_p12), %s313_s22, 32  }
  0x33   : > { %815 = vsyncadd (%p954_p12), %s313_s22, 4294967264 }
  0x34   : > { %817 = dma.done.wait (%p48_p1), [#allocation8], 768  }
  0x35   : > { %819 = vsyncadd (%p48_p1), [#allocation8], 4294966528  ;;  %p364_p3 = scmp.lt.s32.totalorder %s916_s13, 7  ;;  %s1011_s24 = scalar_lea.vmem [#allocation10], %s595_s21 }
  0x36   : > { %p1078_p4 = scmp.ne.s32.totalorder %s916_s13, 0 }
  0x37   : > { %s365_s2 = scalar_select %p364_p3, %s916_s13, 7 }
  0x38   : > { %371 = sbr.rel (%p1078_p4) target bundleno = 63 (0x3f), region = 64 }
  0x39   : > { %s599_s3 = sshll.u32 %s365_s2, 1 }
  0x3a   : > { %s1009_s26 = scalar_lea.vmem %s1066_s7, %s599_s3 }
  0x3d   : > { %v372_v0 = vld [vmem:[%s1060_s1] sm:$0x3]  ;;  %vm373_vm0 = vcmask 254976  }
  0x3e   : > { %374 = vst.msk [vmem:[#allocation2] sm:$0x3] %vm373_vm0, %v372_v0 }
  0x3f PF: > { %v382_v1 = vld [vmem:[#allocation9 + $0x18] sm:$0xff]  ;;  %v381_v2 = vld [vmem:[#allocation9 + $0x10] sm:$0xff]  ;;  %v380_v5 = vld [vmem:[#allocation9 + $0x8] sm:$0xff]  ;;  %vm407_vm1 = vcmask 130048   ;;  %vm383_vm2 = vcmask 261120   ;;  %s604_s18 = sshll.u32 %s916_s13, 1 }
  0x40   : > { %399 = vmatpush.msra.mxu0 %v382_v1  ;;  %v378_v3 = vld [vmem:[#allocation7 + $0x8] sm:$0xff]  ;;  %v377_v4 = vld [vmem:[#allocation7] sm:$0xff]  ;;  %v375_v6 = vld [vmem:[%s316_s17] sm:$0x3]  ;;  %s469_s6 = scalar_lea.hbm %s1067_s8, %s604_s18  ;;  %s471_s3 = sshll.u32 %s1011_s24, 4  ;;  %vm436_vm3 = vcmask 254976   ;;  %s472_s3 = int_to_ptr.vmem [resolvable:$true] %s471_s3 }
  0x41   : > { %425 = vmatpush.msra.mxu1 %v378_v3  ;;  %v379_v7 = vld [vmem:[#allocation9] sm:$0xff]  ;;  %v676_v10 = vld [vmem:[%s1063_s4] ss:$0 sm:$0xff]  ;;  %s473_s14 = sshll.u32 %s469_s6, 4  ;;  %s456_s13 = scalar_lea.sflag [#allocation6], %s992_s12  ;;  %s474_s14 = int_to_ptr.hbm [resolvable:$true] %s473_s14 }
  0x42   : > { %400 = vmatpush.msra.mxu0 %v381_v2  ;;  %v677_v13 = vld [vmem:[%s1064_s5] ss:$0 sm:$0xff]  ;;  %s782_s23 = sshra.s32 %s474_s14, 4  ;;  %s788_s19 = scalar_lea.hbm %s1067_s8, 16  ;;  %s783_s23 = int_to_ptr.hbm [resolvable:$true] %s782_s23 }
  0x43   : > { %426 = vmatpush.msra.mxu1 %v377_v4  ;;  %s784_s11 = scalar_lea.hbm %s783_s23, 2  ;;  %p789_p8 = scmp.lt.s32.totalorder %s783_s23, %s1067_s8 }
  0x44   : > { %401 = vmatpush.msra.mxu0 %v380_v5  ;;  %602 = vmatmul.msk.f32.vlgmr.msra.gmra.mxu1 %vm407_vm1, %v375_v6  ;;  %p785_p1 = scmp.ne.s32.totalorder %s783_s23, %s784_s11  ;;  %p790_p9 = scmp.lt.s32.totalorder %s788_s19, %s784_s11 }
  0x45   : > { %v376_v8 = vld [vmem:[#allocation2] sm:$0x3] }
  0x46   : > { %402 = vmatpush.msra.mxu0 %v379_v7  ;;  %p786_p12 = pnand %p785_p1, %p961_p5  ;;  %p791_p10 = por %p790_p9, %p789_p8 }
  0x47   : > { %601 = vmatmul.msk.f32.vlgmr.msra.gmra.mxu0 %vm383_vm2, %v376_v8 }
  0x48   : > { %p787_p7 = pneg %p786_p12 }
  0x4a   : > { %p792_p13 = pnand %p791_p10, %p787_p7 }
  0xc1   : > { %v428_v9 = vpop.f32.mrf.mxu1 }
  0xc4   : > { %v404_v11 = vpop.f32.mrf.mxu0 }
  0xc5   : > { %v429_v12 = vadd.f32 %v428_v9, %v404_v11 }
  0xc7   : > { %v435_v14 = vadd.f32 %v676_v10, %v429_v12 }
  0xc9   : > { %437 = vst.msk [vmem:[#allocation2] sm:$0x3] %vm436_vm3, %v435_v14  ;;  %v443_v15 = vmul.f32 %v677_v13, %v435_v14 }
  0xca   : > { %438 = vst.msk [vmem:[%s1011_s24] sm:$0x3] %vm436_vm3, %v435_v14 }
  0xcb   : > { %v444_v16 = vsel %vm436_vm3, %v443_v15, 0.0 }
  0xcc   : > { %795 = shalt.err (!%p792_p13)
}
  0xcd   : > { %617 = dma.vmem_to_hbm [thread:$0]  (%p961_p5), %s472_s3, 32, %s474_s14, %s456_s13   ;;  %445 = vadd.xlane.f32.xlu0 %v444_v16 }
  0xce   : > { %s447_s12 = sld [smem:[#allocation3]] }
  0xd4   : > { %v448_v17 = vstv %s447_s12 }
 0x140   : > { %v446_v18 = vpop.xlane.xlu0 %445 }
 0x141   : > { %v449_v19 = vadd.f32 %v448_v17, %v446_v18 }
 0x143   : > { %450 = vst [vmem:[%s1009_s26] sm:$0x3] %v449_v19 }
 0x144 PF: > { %p639_p11 = scmp.ge.s32.totalorder %s838_s10, 2  ;;  %s492_s24 = sand.u32 1, %s826_s29  }
 0x145   : > { %s493_s21 = scalar_lea.sflag [#allocation6], %s492_s24 }
 0x146   : > { %p631_p0 = pnand %p639_p11, %p965_p6 }
 0x148   : > { %p632_p2 = pneg %p631_p0 }
 0x14a   : > { %821 = dma.done.wait (%p632_p2), %s493_s21, 32  }
 0x14b   : > { %823 = vsyncadd (%p632_p2), %s493_s21, 4294967264  ;;  %p24_p5 = scmp.ge.s32.totalorder %s935_s25, 10   ;;  %s1079_s29 = smov %s830_s30 }
 0x14c   : > { %s1080_s30 = smov %s834_s9  ;;  %s1081_s9 = smov %s946_s28 }
 0x14d   : > { %s1082_s10 = smov %s935_s25  ;;  %26 = sbr.rel (!%p24_p5) target bundleno = 10 (0xa), region = 117 }
 0x152   :  { %499 = vsyncpa [#allocation5], 1 }
 0x153   :  { %501 = vsyncpa [#allocation5 + $0x1], 1 }
 0x154   :  { %502 = vsyncpa [#allocation8], 1 }
 0x155   :  { %503 = vsyncpa [#allocation6], 1 }
 0x156   :  { %505 = vsyncpa [#allocation6 + $0x1], 1 }

</bundles_post_ra>
